<compile_context>
chip_gen: v7x
topology: tpu7x:2x2x1
jax: 0.10.0
libtpu: 0.0.40
codegen_flags: <defaults>
</compile_context>

<pallas_src>
import jax
import jax.numpy as jnp
from jax import lax
from jax.experimental import pallas as pl
from jax.experimental.pallas import tpu as pltpu


def _round_up(v: int, m: int) -> int:
    return ((v + m - 1) // m) * m


def _mlp_softmax_kernel(x_ref,
                        w1_ref, b1_ref,
                        w2_ref, b2_ref,
                        w3_ref, b3_ref,
                        wd_ref, bd_ref,
                        p_ref):
    """Fused 3x(Linear+ReLU) + folded 2-class softmax, batch-on-lanes.

    x_ref:  (TB, N)   batch tile (batch on sublanes, N features on lanes)
    w*:     (fout, fin) PyTorch-layout weights (resident)
    b*:     (fout, 1)   biases (broadcast along lanes)
    wd/bd:  folded final layer: (1, 2N) row = w4[1]-w4[0], (1, 1) = b4[1]-b4[0]
    p_ref:  (2, TB)   [p0; p1] = softmax(logits) with batch on lanes
    """
    x = x_ref[...]                                            # (TB, N) f32

    # Layer 1: (2N, N) contracted with (TB, N) on the feature axis -> (2N, TB).
    h1 = lax.dot_general(w1_ref[...], x, (((1,), (1,)), ((), ())),
                         preferred_element_type=jnp.float32) + b1_ref[...]
    h1 = jnp.maximum(h1, 0.0)                                 # ReLU (dropout = identity)

    # Layers 2/3: standard (fout, fin) @ (fin, TB) matmuls, lane-dense outputs.
    h2 = jnp.dot(w2_ref[...], h1,
                 preferred_element_type=jnp.float32) + b2_ref[...]
    h2 = jnp.maximum(h2, 0.0)

    h3 = jnp.dot(w3_ref[...], h2,
                 preferred_element_type=jnp.float32) + b3_ref[...]
    h3 = jnp.maximum(h3, 0.0)

    # Logit difference d = l1 - l0; softmax([l0, l1]) = [sigmoid(-d), sigmoid(d)].
    d = jnp.dot(wd_ref[...], h3,
                preferred_element_type=jnp.float32) + bd_ref[...]          # (1, TB)
    z = jnp.concatenate([-d, d], axis=0)                                   # (2, TB)
    # Stable sigmoid via tanh (EUP op): sigmoid(z) = 0.5 * (tanh(z/2) + 1).
    p_ref[...] = (0.5 * (jnp.tanh(0.5 * z) + 1.0)).astype(p_ref.dtype)


def net_forward(x, params, *, block_b: int = 2048):
    """x: (B, N) float32; params in PyTorch (out, in) layout. Returns (B, 2) softmax."""
    B, N = x.shape
    w1, b1 = params["w1"], params["b1"]
    w2, b2 = params["w2"], params["b2"]
    w3, b3 = params["w3"], params["b3"]
    w4, b4 = params["w4"], params["b4"]

    # Fold final Linear(2N, 2) into a single logit-difference row (done once).
    wd = w4[1:2, :] - w4[0:1, :]                  # (1, 2N)
    bd = (b4[1] - b4[0]).reshape(1, 1)            # (1, 1)

    # Column biases so they broadcast along the lane (batch) axis in-kernel.
    b1c, b2c, b3c = b1[:, None], b2[:, None], b3[:, None]

    # Batch tile: lane-dense (multiple of 128), capped by block_b, and sized to
    # give >= 2 grid steps for mid/large batches (v7x megacore sharding).
    TB = max(128, min(block_b, _round_up(pl.cdiv(_round_up(B, 8), 2), 128)))
    Bp = _round_up(B, TB)
    xp = jnp.pad(x, ((0, Bp - B), (0, 0))) if Bp != B else x

    grid = (Bp // TB,)
    const = lambda i: (0, 0)                      # weights/biases stay resident

    probs_t = pl.pallas_call(
        _mlp_softmax_kernel,
        out_shape=jax.ShapeDtypeStruct((2, Bp), jnp.float32),
        grid=grid,
        in_specs=[
            pl.BlockSpec((TB, N), lambda i: (i, 0)),       # x tile
            pl.BlockSpec(w1.shape, const), pl.BlockSpec(b1c.shape, const),
            pl.BlockSpec(w2.shape, const), pl.BlockSpec(b2c.shape, const),
            pl.BlockSpec(w3.shape, const), pl.BlockSpec(b3c.shape, const),
            pl.BlockSpec(wd.shape, const), pl.BlockSpec(bd.shape, const),
        ],
        out_specs=pl.BlockSpec((2, TB), lambda i: (0, i)),  # lane-dense output
        compiler_params=pltpu.CompilerParams(
            dimension_semantics=("parallel",)),
    )(xp, w1, b1c, w2, b2c, w3, b3c, wd, bd)

    return probs_t.T[:B]                           # (B, 2)


def init_params(key, N=8):
    """PyTorch nn.Linear default init: U(-1/sqrt(fan_in), 1/sqrt(fan_in)).
    Weights stored in PyTorch layout (out_features, in_features); biases (out,)."""
    dims = [(N, 2 * N), (2 * N, 4 * N), (4 * N, 2 * N), (2 * N, 2)]
    params = {}
    for i, (fin, fout) in enumerate(dims, start=1):
        key, kw, kb = jax.random.split(key, 3)
        bound = 1.0 / jnp.sqrt(float(fin))
        params[f"w{i}"] = jax.random.uniform(
            kw, (fout, fin), jnp.float32, minval=-bound, maxval=bound)
        params[f"b{i}"] = jax.random.uniform(
            kb, (fout,), jnp.float32, minval=-bound, maxval=bound)
    return params


def _reference(x, params):
    """Pure-JAX reference (eval-mode forward of Net)."""
    h = x
    for i in range(1, 4):
        h = jnp.maximum(h @ params[f"w{i}"].T + params[f"b{i}"], 0.0)
    logits = h @ params["w4"].T + params["b4"]
    return jax.nn.softmax(logits, axis=1)


if __name__ == "__main__":
    key = jax.random.PRNGKey(0)
    k_params, k_x1, k_x2 = jax.random.split(key, 3)

    N = 8        # initial layer size (matches Net(N=8))
    B = 2        # small batch

    params = init_params(k_params, N=N)

    # Small-batch check (single grid step, padded to one 128-row tile).
    x = jax.random.normal(k_x1, (B, N), dtype=jnp.float32)
    out = jax.block_until_ready(net_forward(x, params))
    assert out.shape == (B, 2)
    assert jnp.allclose(jnp.sum(out, axis=1), 1.0, atol=1e-5)
    assert jnp.allclose(out, _reference(x, params), atol=1e-5)

    # Multi-step grid check (exercises batch tiling / pipelining / parallel axis).
    B2 = 300
    x2 = jax.random.normal(k_x2, (B2, N), dtype=jnp.float32)
    out2 = jax.block_until_ready(net_forward(x2, params, block_b=128))
    assert out2.shape == (B2, 2)
    assert jnp.allclose(jnp.sum(out2, axis=1), 1.0, atol=1e-5)
    assert jnp.allclose(out2, _reference(x2, params), atol=1e-5)

    print("KERNEL_OK")
</pallas_src>

<mosaic_0001>
module attributes {stable_mosaic.version = 11 : i64} {
  func.func @_mlp_softmax_kernel(%arg0: i32, %arg1: memref<128x8xf32, #tpu.memory_space<vmem>>, %arg2: memref<16x8xf32, #tpu.memory_space<vmem>>, %arg3: memref<16x1xf32, #tpu.memory_space<vmem>>, %arg4: memref<32x16xf32, #tpu.memory_space<vmem>>, %arg5: memref<32x1xf32, #tpu.memory_space<vmem>>, %arg6: memref<16x32xf32, #tpu.memory_space<vmem>>, %arg7: memref<16x1xf32, #tpu.memory_space<vmem>>, %arg8: memref<1x16xf32, #tpu.memory_space<vmem>>, %arg9: memref<1x1xf32, #tpu.memory_space<vmem>>, %arg10: memref<2x128xf32, #tpu.memory_space<vmem>>) attributes {dimension_semantics = [#tpu.dimension_semantics<parallel>], iteration_bounds = array<i64: 1>, scalar_prefetch = 0 : i64, scratch_operands = 0 : i64, tpu.core_type = #tpu.core_type<tc>, window_params = [{transform_indices = @transform_0, window_bounds = array<i64: 128, 8>}, {pipeline_mode = #tpu.pipeline_mode<synchronous>, transform_indices = @transform_1, window_bounds = array<i64: 16, 8>}, {pipeline_mode = #tpu.pipeline_mode<synchronous>, transform_indices = @transform_2, window_bounds = array<i64: 16, 1>}, {pipeline_mode = #tpu.pipeline_mode<synchronous>, transform_indices = @transform_3, window_bounds = array<i64: 32, 16>}, {pipeline_mode = #tpu.pipeline_mode<synchronous>, transform_indices = @transform_4, window_bounds = array<i64: 32, 1>}, {pipeline_mode = #tpu.pipeline_mode<synchronous>, transform_indices = @transform_5, window_bounds = array<i64: 16, 32>}, {pipeline_mode = #tpu.pipeline_mode<synchronous>, transform_indices = @transform_6, window_bounds = array<i64: 16, 1>}, {pipeline_mode = #tpu.pipeline_mode<synchronous>, transform_indices = @transform_7, window_bounds = array<i64: 1, 16>}, {pipeline_mode = #tpu.pipeline_mode<synchronous>, transform_indices = @transform_8, window_bounds = array<i64: 1, 1>}, {transform_indices = @transform_9, window_bounds = array<i64: 2, 128>}]} {
    %c0 = arith.constant 0 : index
    %c0_0 = arith.constant 0 : index
    %0 = vector.load %arg1[%c0, %c0_0] : memref<128x8xf32, #tpu.memory_space<vmem>>, vector<128x8xf32>
    %c0_1 = arith.constant 0 : index
    %c0_2 = arith.constant 0 : index
    %1 = vector.load %arg2[%c0_1, %c0_2] : memref<16x8xf32, #tpu.memory_space<vmem>>, vector<16x8xf32>
    %cst = arith.constant dense<0.000000e+00> : vector<16x128xf32>
    %2 = tpu.matmul %1, %0, %cst {dimension_numbers = #tpu.dot_dimension_numbers<[1], [1], [0], [0], [0, 0, 1, 0], [], []>} : vector<16x8xf32>, vector<128x8xf32>, vector<16x128xf32> -> vector<16x128xf32>
    %c0_3 = arith.constant 0 : index
    %c0_4 = arith.constant 0 : index
    %3 = vector.load %arg3[%c0_3, %c0_4] : memref<16x1xf32, #tpu.memory_space<vmem>>, vector<16x1xf32>
    %4 = vector.broadcast %3 : vector<16x1xf32> to vector<16x128xf32>
    %5 = arith.addf %2, %4 : vector<16x128xf32>
    %cst_5 = arith.constant 0.000000e+00 : f32
    %6 = vector.broadcast %cst_5 : f32 to vector<16x128xf32>
    %7 = arith.maximumf %5, %6 : vector<16x128xf32>
    %c0_6 = arith.constant 0 : index
    %c0_7 = arith.constant 0 : index
    %8 = vector.load %arg4[%c0_6, %c0_7] : memref<32x16xf32, #tpu.memory_space<vmem>>, vector<32x16xf32>
    %cst_8 = arith.constant dense<0.000000e+00> : vector<32x128xf32>
    %9 = tpu.matmul %8, %7, %cst_8 {dimension_numbers = #tpu.dot_dimension_numbers<[1], [0], [0], [1], [0, 0, 1, 1], [], []>} : vector<32x16xf32>, vector<16x128xf32>, vector<32x128xf32> -> vector<32x128xf32>
    %c0_9 = arith.constant 0 : index
    %c0_10 = arith.constant 0 : index
    %10 = vector.load %arg5[%c0_9, %c0_10] : memref<32x1xf32, #tpu.memory_space<vmem>>, vector<32x1xf32>
    %11 = vector.broadcast %10 : vector<32x1xf32> to vector<32x128xf32>
    %12 = arith.addf %9, %11 : vector<32x128xf32>
    %cst_11 = arith.constant 0.000000e+00 : f32
    %13 = vector.broadcast %cst_11 : f32 to vector<32x128xf32>
    %14 = arith.maximumf %12, %13 : vector<32x128xf32>
    %c0_12 = arith.constant 0 : index
    %c0_13 = arith.constant 0 : index
    %15 = vector.load %arg6[%c0_12, %c0_13] : memref<16x32xf32, #tpu.memory_space<vmem>>, vector<16x32xf32>
    %cst_14 = arith.constant dense<0.000000e+00> : vector<16x128xf32>
    %16 = tpu.matmul %15, %14, %cst_14 {dimension_numbers = #tpu.dot_dimension_numbers<[1], [0], [0], [1], [0, 0, 1, 1], [], []>} : vector<16x32xf32>, vector<32x128xf32>, vector<16x128xf32> -> vector<16x128xf32>
    %c0_15 = arith.constant 0 : index
    %c0_16 = arith.constant 0 : index
    %17 = vector.load %arg7[%c0_15, %c0_16] : memref<16x1xf32, #tpu.memory_space<vmem>>, vector<16x1xf32>
    %18 = vector.broadcast %17 : vector<16x1xf32> to vector<16x128xf32>
    %19 = arith.addf %16, %18 : vector<16x128xf32>
    %cst_17 = arith.constant 0.000000e+00 : f32
    %20 = vector.broadcast %cst_17 : f32 to vector<16x128xf32>
    %21 = arith.maximumf %19, %20 : vector<16x128xf32>
    %c0_18 = arith.constant 0 : index
    %c0_19 = arith.constant 0 : index
    %22 = vector.load %arg8[%c0_18, %c0_19] : memref<1x16xf32, #tpu.memory_space<vmem>>, vector<1x16xf32>
    %cst_20 = arith.constant dense<0.000000e+00> : vector<1x128xf32>
    %23 = tpu.matmul %22, %21, %cst_20 {dimension_numbers = #tpu.dot_dimension_numbers<[1], [0], [0], [1], [0, 0, 1, 1], [], []>} : vector<1x16xf32>, vector<16x128xf32>, vector<1x128xf32> -> vector<1x128xf32>
    %c0_21 = arith.constant 0 : index
    %c0_22 = arith.constant 0 : index
    %24 = vector.load %arg9[%c0_21, %c0_22] : memref<1x1xf32, #tpu.memory_space<vmem>>, vector<1x1xf32>
    %25 = vector.broadcast %24 : vector<1x1xf32> to vector<1x128xf32>
    %26 = arith.addf %23, %25 : vector<1x128xf32>
    %cst_23 = arith.constant 0.000000e+00 : f32
    %27 = vector.broadcast %cst_23 : f32 to vector<1x128xf32>
    %28 = arith.subf %27, %26 : vector<1x128xf32>
    %29 = tpu.concatenate %28, %26 in 0 : vector<1x128xf32>, vector<1x128xf32> -> vector<2x128xf32>
    %cst_24 = arith.constant 5.000000e-01 : f32
    %30 = vector.broadcast %cst_24 : f32 to vector<2x128xf32>
    %31 = arith.mulf %30, %29 : vector<2x128xf32>
    %32 = math.tanh %31 : vector<2x128xf32>
    %cst_25 = arith.constant 1.000000e+00 : f32
    %33 = vector.broadcast %cst_25 : f32 to vector<2x128xf32>
    %34 = arith.addf %32, %33 : vector<2x128xf32>
    %cst_26 = arith.constant 5.000000e-01 : f32
    %35 = vector.broadcast %cst_26 : f32 to vector<2x128xf32>
    %36 = arith.mulf %35, %34 : vector<2x128xf32>
    %c0_27 = arith.constant 0 : index
    %c0_28 = arith.constant 0 : index
    %37 = vector.load %arg10[%c0_27, %c0_28] : memref<2x128xf32, #tpu.memory_space<vmem>>, vector<2x128xf32>
    tpu.vector_store %arg10[%c0_27, %c0_28], %36 {strides = array<i32>} : memref<2x128xf32, #tpu.memory_space<vmem>>, vector<2x128xf32>,
    return
  }
  func.func @transform_0(%arg0: i32) -> (i32, i32) {
    %c0_i32 = arith.constant 0 : i32
    %c0_i32_0 = arith.constant 0 : i32
    return %arg0, %c0_i32 : i32, i32
  }
  func.func @transform_1(%arg0: i32) -> (i32, i32) {
    %c0_i32 = arith.constant 0 : i32
    %c0_i32_0 = arith.constant 0 : i32
    %c0_i32_1 = arith.constant 0 : i32
    return %c0_i32, %c0_i32_0 : i32, i32
  }
  func.func @transform_2(%arg0: i32) -> (i32, i32) {
    %c0_i32 = arith.constant 0 : i32
    %c0_i32_0 = arith.constant 0 : i32
    %c0_i32_1 = arith.constant 0 : i32
    return %c0_i32, %c0_i32_0 : i32, i32
  }
  func.func @transform_3(%arg0: i32) -> (i32, i32) {
    %c0_i32 = arith.constant 0 : i32
    %c0_i32_0 = arith.constant 0 : i32
    %c0_i32_1 = arith.constant 0 : i32
    return %c0_i32, %c0_i32_0 : i32, i32
  }
  func.func @transform_4(%arg0: i32) -> (i32, i32) {
    %c0_i32 = arith.constant 0 : i32
    %c0_i32_0 = arith.constant 0 : i32
    %c0_i32_1 = arith.constant 0 : i32
    return %c0_i32, %c0_i32_0 : i32, i32
  }
  func.func @transform_5(%arg0: i32) -> (i32, i32) {
    %c0_i32 = arith.constant 0 : i32
    %c0_i32_0 = arith.constant 0 : i32
    %c0_i32_1 = arith.constant 0 : i32
    return %c0_i32, %c0_i32_0 : i32, i32
  }
  func.func @transform_6(%arg0: i32) -> (i32, i32) {
    %c0_i32 = arith.constant 0 : i32
    %c0_i32_0 = arith.constant 0 : i32
    %c0_i32_1 = arith.constant 0 : i32
    return %c0_i32, %c0_i32_0 : i32, i32
  }
  func.func @transform_7(%arg0: i32) -> (i32, i32) {
    %c0_i32 = arith.constant 0 : i32
    %c0_i32_0 = arith.constant 0 : i32
    %c0_i32_1 = arith.constant 0 : i32
    return %c0_i32, %c0_i32_0 : i32, i32
  }
  func.func @transform_8(%arg0: i32) -> (i32, i32) {
    %c0_i32 = arith.constant 0 : i32
    %c0_i32_0 = arith.constant 0 : i32
    %c0_i32_1 = arith.constant 0 : i32
    return %c0_i32, %c0_i32_0 : i32, i32
  }
  func.func @transform_9(%arg0: i32) -> (i32, i32) {
    %c0_i32 = arith.constant 0 : i32
    %c0_i32_0 = arith.constant 0 : i32
    return %c0_i32, %arg0 : i32, i32
  }
}

</mosaic_0001>

<bundles_post_ra>
// kernel: tpu_custom_call.1
= control target key start
LH: loop header
LB: loop body
LE: loop exit
PB: predicated region body
PF: predicated region fallthrough
CT: control target
= control target key end

     0   :  { %s967_s0 = inlined_call_operand.vmem [shape: f32[128,8], index: 0, kind: input, shape index: {}]   ;;  %s968_s1 = inlined_call_operand.vmem [shape: f32[16,8], index: 1, kind: input, shape index: {}]   ;;  %s969_s2 = inlined_call_operand.vmem [shape: f32[16,1], index: 2, kind: input, shape index: {}]   ;;  %s970_s3 = inlined_call_operand.vmem [shape: f32[32,16], index: 3, kind: input, shape index: {}]   ;;  %s971_s4 = inlined_call_operand.vmem [shape: f32[32,1], index: 4, kind: input, shape index: {}]   ;;  %s972_s5 = inlined_call_operand.vmem [shape: f32[16,32], index: 5, kind: input, shape index: {}]   ;;  %s973_s6 = inlined_call_operand.vmem [shape: f32[16,1], index: 6, kind: input, shape index: {}]   ;;  %s974_s7 = inlined_call_operand.vmem [shape: f32[1,16], index: 7, kind: input, shape index: {}]   ;;  %s975_s8 = inlined_call_operand.<no memory space> [shape: f32[1,1], index: 8, kind: input, shape index: {}]   ;;  %s976_s9 = inlined_call_operand.hbm [shape: f32[2,128], index: 9, kind: output, shape index: {}]  }
   0x1   :  { %v14_v0 = vstv %s975_s8 }
   0x2   :  { %15 = vst [vmem:[#allocation2] sm:$0x1] %v14_v0 }
   0x3   :  { %v35_v1 = vld [vmem:[%s967_s0] sm:$0xff]  ;;  %v36_v2 = vld [vmem:[%s967_s0 + $0x8] sm:$0xff]  ;;  %vm65_vm0 = vcmask 64512   ;;  %v37_v3 = vld [vmem:[%s967_s0 + $0x10] sm:$0xff]  ;;  %v751_v7 = vmov 0  }
   0x4   :  { %v655_v4 = vpack.c.bf16 %v36_v2, %v35_v1  ;;  %vm820_vm1 = vmpackc.low %vm65_vm0, %vm65_vm0  ;;  %v38_v6 = vld [vmem:[%s967_s0 + $0x18] sm:$0xff]  ;;  %723 = vset.pattern.permute.xlu0 %v751_v7  ;;  %724 = vset.pattern.permute.xlu1 %v751_v7  ;;  %v51_v9 = vld [vmem:[%s968_s1] sm:$0xff] }
   0x5   :  { %v661_v8 = vpack.c.bf16 %v38_v6, %v37_v3  ;;  %v39_v10 = vld [vmem:[%s967_s0 + $0x20] sm:$0xff]  ;;  %v40_v11 = vld [vmem:[%s967_s0 + $0x28] sm:$0xff]  ;;  %624 = vmatprep.mubr.msk.f32.mxu0 %vm65_vm0, %v51_v9 }
   0x6   :  { %657 = vmatprep.subr.msk.bf16.mxu0 %vm820_vm1, %v655_v4  ;;  %v53_v12 = vld [vmem:[%s969_s2] sm:$0xff]  ;;  %v54_v13 = vld [vmem:[%s969_s2 + $0x8] sm:$0xff] }
   0x7   :  { %660 = vmatpush3.bf16.xpose.msk.msra.mxu0 %vm820_vm1, %v655_v4  ;;  %57 = vperm.xlu0 %723, %v53_v12  }
   0x8   :  { %663 = vmatprep.subr.msk.bf16.mxu0 %vm820_vm1, %v661_v8 }
   0x9   :  { %16 = vsyncpa [#allocation4], 0  ;;  %v667_v14 = vpack.c.bf16 %v40_v11, %v39_v10  ;;  %v203_v15 = vld [vmem:[%s971_s4 + $0x10] sm:$0xff]  ;;  %v42_v17 = vld [vmem:[%s967_s0 + $0x38] sm:$0xff]  ;;  %vm225_vm2 = vcmask 130048   ;;  %vm341_vm3 = vcmask 261120  }
   0xa   :  { %v41_v16 = vld [vmem:[%s967_s0 + $0x30] sm:$0xff]  ;;  %v329_v18 = vld [vmem:[%s973_s6] sm:$0xff]  ;;  %v44_v22 = vld [vmem:[%s967_s0 + $0x48] sm:$0xff]  ;;  %v752_v7 = vmov 0.0|0.0   ;;  %vm753_vm4 = vmmov 0   ;;  %vm513_vm5 = vcmask 1040384  }
   0xb   :  { %62 = vperm.xlu0 %723, %v54_v13   ;;  %v673_v19 = vpack.c.bf16 %v42_v17, %v41_v16  ;;  %v426_v20 = vld [vmem:[#allocation2] sm:$0x1]  ;;  %v45_v24 = vld [vmem:[%s967_s0 + $0x50] sm:$0xff]  ;;  %v46_v25 = vld [vmem:[%s967_s0 + $0x58] sm:$0xff] }
   0xc   :  { %v43_v21 = vld [vmem:[%s967_s0 + $0x40] sm:$0xff]  ;;  %v685_v26 = vpack.c.bf16 %v46_v25, %v45_v24  ;;  %v48_v28 = vld [vmem:[%s967_s0 + $0x68] sm:$0xff]  ;;  %v49_v30 = vld [vmem:[%s967_s0 + $0x70] sm:$0xff] }
   0xd   :  { %v679_v23 = vpack.c.bf16 %v44_v22, %v43_v21  ;;  %v47_v27 = vld [vmem:[%s967_s0 + $0x60] sm:$0xff]  ;;  %v50_v31 = vld [vmem:[%s967_s0 + $0x78] sm:$0xff]  ;;  %v52_v33 = vld [vmem:[%s968_s1 + $0x8] sm:$0xff] }
   0xe   :  { %v691_v29 = vpack.c.bf16 %v48_v28, %v47_v27  ;;  %v697_v32 = vpack.c.bf16 %v50_v31, %v49_v30  ;;  %v197_v34 = vld [vmem:[%s970_s3] sm:$0xff]  ;;  %v202_v36 = vld [vmem:[%s971_s4 + $0x8] sm:$0xff]  ;;  %v204_v37 = vld [vmem:[%s971_s4 + $0x18] sm:$0xff] }
   0xf   :  { %666 = vmatpush3.bf16.xpose.msk.msra.mxu0 %vm820_vm1, %v661_v8  ;;  %217 = vperm.xlu0 %723, %v203_v15   ;;  %v201_v35 = vld [vmem:[%s971_s4] sm:$0xff]  ;;  %v330_v38 = vld [vmem:[%s973_s6 + $0x8] sm:$0xff]  ;;  %v199_v49 = vld [vmem:[%s970_s3 + $0x10] sm:$0xff]  ;;  %v754_v8 = vmov 0.0  }
  0x10   :  { %669 = vmatprep.subr.msk.bf16.mxu0 %vm820_vm1, %v667_v14  ;;  %631 = vmatprep.mubr.msk.f32.mxu1 %vm225_vm2, %v197_v34  ;;  %v198_v48 = vld [vmem:[%s970_s3 + $0x8] sm:$0xff]  ;;  %v200_v50 = vld [vmem:[%s970_s3 + $0x18] sm:$0xff]  ;;  %v327_v51 = vld [vmem:[%s972_s5] sm:$0xff] }
  0x11   :  { %207 = vperm.xlu1 %724, %v201_v35   ;;  %v328_v6 = vld [vmem:[%s972_s5 + $0x8] sm:$0xff]  ;;  %s755_s5 = smov [#allocation3]  }
  0x12   :  { %s526_s25 = sshll.u32 %s755_s5, 4  ;;  %s527_s25 = int_to_ptr.vmem [resolvable:$true] %s526_s25 }
  0x13   :  { %333 = vperm.xlu0 %723, %v329_v18   ;;  %v425_v18 = vld [vmem:[%s974_s7] sm:$0x1]  ;;  %s727_s7 = scalar_lea.vmem %s527_s25, 32  ;;  %p732_p1 = scmp.lt.s32.totalorder %s527_s25, %s527_s25 }
  0x14   :  { %p728_p0 = scmp.ne.s32.totalorder %s527_s25, %s727_s7  ;;  %p733_p2 = scmp.lt.s32.totalorder %s727_s7, %s727_s7 }
  0x15   :  { %212 = vperm.xlu1 %724, %v202_v36  }
  0x16   :  { %p734_p3 = por %p733_p2, %p732_p1 }
  0x17   :  { %672 = vmatpush3.bf16.xpose.msk.msra.mxu0 %vm820_vm1, %v667_v14  ;;  %429 = vperm.xlu0 %723, %v426_v20  }
  0x18   :  { %675 = vmatprep.subr.msk.bf16.mxu0 %vm820_vm1, %v673_v19  ;;  %p735_p4 = pnand %p734_p3, %p728_p0 }
  0x19   :  { %222 = vperm.xlu1 %724, %v204_v37  }
  0x1d   :  { %338 = vperm.xlu1 %724, %v330_v38  }
  0x1f   :  { %678 = vmatpush3.bf16.xpose.msk.msra.mxu0 %vm820_vm1, %v673_v19  ;;  %v432_v19 = vlaneseq }
  0x20   :  { %681 = vmatprep.subr.msk.bf16.mxu0 %vm820_vm1, %v679_v23 }
  0x21   :  { %v433_v20 = vshrl.u32 %v432_v19, 7 }
  0x23   :  { %v434_v21 = vsub.s32 0, %v433_v20 }
  0x27   :  { %684 = vmatpush3.bf16.xpose.msk.msra.mxu0 %vm820_vm1, %v679_v23 }
  0x28   :  { %687 = vmatprep.subr.msk.bf16.mxu0 %vm820_vm1, %v685_v26 }
  0x2f   :  { %690 = vmatpush3.bf16.xpose.msk.msra.mxu0 %vm820_vm1, %v685_v26 }
  0x30   :  { %693 = vmatprep.subr.msk.bf16.mxu0 %vm820_vm1, %v691_v29 }
  0x37   :  { %696 = vmatpush3.bf16.xpose.msk.msra.mxu0 %vm820_vm1, %v691_v29 }
  0x38   :  { %699 = vmatprep.subr.msk.bf16.mxu0 %vm820_vm1, %v697_v32 }
  0x3f   :  { %702 = vmatpush3.bf16.xpose.msk.msra.mxu0 %vm820_vm1, %v697_v32 }
  0x46   :  { %625 = vmatmul.mubr.msk.f32.vlgmr.msra.gmra.mrb[0].mxu0 %vm65_vm0, %v52_v33 }
  0x86   :  { %v58_v39 = vpop.permute.xlu0 %57 }
  0x8a   :  { %v63_v40 = vpop.permute.xlu0 %62 }
  0x8e   :  { %v218_v62 = vpop.permute.xlu0 %217 }
  0x90   :  { %v208_v52 = vpop.permute.xlu1 %207 }
  0x92   :  { %v334_v11 = vpop.permute.xlu0 %333 }
  0x94   :  { %v213_v53 = vpop.permute.xlu1 %212 }
  0x96   :  { %v430_v22 = vpop.permute.xlu0 %429 }
  0x97   :  { %v435_v23 = vrot.slane %v430_v22, %v434_v21 }
  0x98   :  { %v223_v59 = vpop.permute.xlu1 %222 }
  0x9c   :  { %v339_v9 = vpop.permute.xlu1 %338 }
 0x119   :  { %v626_v41 = vpop.f32.mrb[0].mxu0 }
 0x11a   :  { %v192_v42 = vadd.f32 %v626_v41, %v63_v40  ;;  %v186_v43 = vpop.f32.mrb[1].mxu0 }
 0x11b   :  { %v187_v44 = vadd.f32 %v186_v43, %v58_v39 }
 0x11c   :  { %v196_v45 = vmax.f32 %v192_v42, 0.0 }
 0x11d   :  { %v195_v46 = vmax.f32 %v187_v44, 0.0 }
 0x11f   :  { %v703_v47 = vpack.c.bf16 %v196_v45, %v195_v46 }
 0x121   :  { %704 = vmatprep.subr.bf16.mxu1 %v703_v47 }
 0x122   :  { %706 = vmatpush3.bf16.msra.mxu1 %v703_v47 }
 0x125   :  { %632 = vmatmul.mubr.msk.f32.vlgmr.msra.gmra.mrb[0].mxu1 %vm225_vm2, %v198_v48 }
 0x126   :  { %634 = vmatprep.mubr.msk.f32.mxu1 %vm225_vm2, %v199_v49 }
 0x129   :  { %635 = vmatmul.mubr.msk.f32.gmra.mrb[2].mxu1 %vm225_vm2, %v200_v50 }
 0x12a   :  { %645 = vmatprep.mubr.msk.f32.mxu1 %vm341_vm3, %v327_v51 }
 0x1f8   :  { %v633_v54 = vpop.f32.mrb[0].mxu1 }
 0x1f9   :  { %v310_v55 = vadd.f32 %v633_v54, %v213_v53  ;;  %v304_v56 = vpop.f32.mrb[1].mxu1 }
 0x1fa   :  { %v305_v57 = vadd.f32 %v304_v56, %v208_v52 }
 0x1fb   :  { %v324_v58 = vmax.f32 %v310_v55, 0.0 }
 0x1fc   :  { %v323_v60 = vmax.f32 %v305_v57, 0.0  ;;  %v636_v61 = vpop.f32.mrb[2].mxu1 }
 0x1fd   :  { %v320_v63 = vadd.f32 %v636_v61, %v223_v59  ;;  %v314_v0 = vpop.f32.mrb[3].mxu1 }
 0x1fe   :  { %v707_v1 = vpack.c.bf16 %v324_v58, %v323_v60  ;;  %v315_v2 = vadd.f32 %v314_v0, %v218_v62 }
 0x1ff   :  { %v326_v3 = vmax.f32 %v320_v63, 0.0 }
 0x200   :  { %v325_v4 = vmax.f32 %v315_v2, 0.0  ;;  %708 = vmatprep.subr.bf16.mxu1 %v707_v1 }
 0x201   :  { %710 = vmatpush3.bf16.msra.mxu1 %v707_v1 }
 0x202   :  { %v711_v5 = vpack.c.bf16 %v326_v3, %v325_v4 }
 0x204   :  { %712 = vmatprep.subr.bf16.mxu1 %v711_v5 }
 0x205   :  { %714 = vmatpush3.bf16.msra.mxu1 %v711_v5 }
 0x206   :  { %715 = vmatprep.subr.bf16.mxu1 %v752_v7 }
 0x208   :  { %646 = vmatmul.mubr.msk.f32.vlgmr.msra.gmra.mrb[4].mxu1 %vm341_vm3, %v328_v6 }
 0x209   :  { %652 = vmatprep.mubr.msk.f32.mxu1 %vm753_vm4, %v754_v8 }
 0x2db   :  { %v647_v10 = vpop.f32.mrb[4].mxu1 }
 0x2dc   :  { %v420_v12 = vadd.f32 %v647_v10, %v339_v9  ;;  %v414_v13 = vpop.f32.mrb[5].mxu1 }
 0x2dd   :  { %v415_v14 = vadd.f32 %v414_v13, %v334_v11 }
 0x2de   :  { %v424_v15 = vmax.f32 %v420_v12, 0.0 }
 0x2df   :  { %v423_v16 = vmax.f32 %v415_v14, 0.0 }
 0x2e1   :  { %v716_v17 = vpack.c.bf16 %v424_v15, %v423_v16 }
 0x2e3   :  { %717 = vmatpush3.bf16.msra.mxu1 %v716_v17 }
 0x2e6   :  { %653 = vmatmul.mubr.msk.f32.vlgmr.msra.gmra.mrb[6].mxu1 %vm225_vm2, %v425_v18 }
 0x3b9   :  { %v505_v24 = vpop.f32.mrb[6].mxu1 }
 0x3ba   :  { %v506_v25 = vadd.f32 %v505_v24, %v435_v23  ;;  %v654_v26 = vpop.f32.mrb[7].mxu1 }
 0x3bc   :  { %v509_v27 = vsub.f32 0.0, %v506_v25  ;;  %v511_v28 = vrot.slane %v506_v25, 7 }
 0x3be   :  { %v514_v29 = vsel %vm513_vm5, %v509_v27, %v511_v28 }
 0x3bf   :  { %v515_v30 = vmul.f32 0.5, %v514_v29 }
 0x3c1   :  { %725 = vtanh.f32 %v515_v30 }
 0x3cb   :  { %v726_v31 = vpop.eup %725 }
 0x3cc   :  { %v517_v32 = vadd.f32 1.0, %v726_v31 }
 0x3ce   :  { %v518_v33 = vmul.f32 0.5, %v517_v32 }
 0x3d0   :  { %519 = vst [vmem:[#allocation3] sm:$0x3] %v518_v33 }
 0x3d1   :  { %738 = shalt.err (!%p735_p4)
}
 0x3d2   :  { %s739_s28 = scalar_lea.hbm %s976_s9, 32 }
 0x3d3   :  { %p740_p5 = scmp.ne.s32.totalorder %s976_s9, %s739_s28  ;;  %p743_p6 = scmp.lt.u32.totalorder %s739_s28, %s976_s9 }
 0x3d5   :  { %p745_p7 = pnand %p743_p6, %p740_p5 }
 0x3d7   :  { %748 = shalt.err (!%p745_p7)
}
 0x3d8   :  { %529 = dma.vmem_to_hbm [thread:$0]  %s527_s25, 32, %s976_s9, [#allocation4]  }
 0x3d9   :  { %749 = dma.done.wait [#allocation4], 32  }
 0x3da   :  { %750 = vsyncadd [#allocation4], 4294967264 }
 0x3db   :  { %533 = vsyncpa [#allocation4], 1 }

</bundles_post_ra>
